<compile_context>
chip_gen: v5e
topology: v5e:2x2
jax: 0.10.0
libtpu: 0.0.40
codegen_flags: <defaults>
</compile_context>

<pallas_src>
import functools

import jax
import jax.numpy as jnp
from jax.experimental import pallas as pl
from jax.experimental.pallas import tpu as pltpu

BN_EPS = 1e-5
LANE = 128


def _round_up(x, m):
    return (x + m - 1) // m * m


def _bn_act_layer(x_bf16, w_bf16, gamma, beta, act):
    """[Linear (bias-free) -> BatchNorm1d (batch stats) -> act], fused.

    Matmul operands are bf16 (MXU-native); accumulation and all BN statistics
    stay in f32.  Variance is the centered, biased estimator (robust to the
    E[h^2]-E[h]^2 cancellation noted in review).  The BN affine is folded into
    a single scale/shift FMA.  Linear biases are intentionally absent:
    training-mode BN subtracts the batch mean, which cancels them exactly.
    """
    h = jnp.dot(x_bf16, w_bf16, preferred_element_type=jnp.float32)  # [B,d_pad] f32
    mean = jnp.mean(h, axis=0, keepdims=True)                        # [1,d_pad]
    var = jnp.mean(jnp.square(h - mean), axis=0, keepdims=True)      # biased
    scale = gamma * jax.lax.rsqrt(var + BN_EPS)                      # [1,d_pad]
    shift = beta - mean * scale
    return act(h * scale + shift)


def generator_kernel(noise_ref, w_ref, aff_ref, out_ref, *, n_noise, d):
    aff = aff_ref[...]                                # [6,d_pad] f32: g1,b1,g2,b2,g3,b3
    x = noise_ref[...].astype(jnp.bfloat16)           # [B,n_noise] (unpadded)
    # Layer 1 runs with K = n_noise; W1's padded rows are zero so results are
    # identical to the padded formulation, with no wrapper-side pad op.
    w1 = w_ref[0][:n_noise, :]                        # [n_noise,d_pad] bf16
    x = _bn_act_layer(x, w1, aff[0:1], aff[1:2], jnp.tanh)
    x = _bn_act_layer(x.astype(jnp.bfloat16), w_ref[1], aff[2:3], aff[3:4], jnp.tanh)
    x = _bn_act_layer(x.astype(jnp.bfloat16), w_ref[2], aff[4:5], aff[5:6],
                      jax.nn.sigmoid)
    # Write only the d live lanes (single masked store) -> no wrapper slice op.
    out_ref[...] = x[:, :d]


def generator_forward(noise, params):
    """noise: [B, n_noise] f32 (unpadded). Returns [B, d] f32."""
    B, n_noise = noise.shape
    d = int(params["d"])
    w_all = params["w_all"]                           # [3,d_pad,d_pad] bf16
    affine = params["affine"]                         # [6,d_pad] f32
    d_pad = w_all.shape[-1]

    kernel = functools.partial(generator_kernel, n_noise=n_noise, d=d)
    out = pl.pallas_call(
        kernel,
        out_shape=jax.ShapeDtypeStruct((B, d), jnp.float32),
        grid=(),
        in_specs=[
            pl.BlockSpec((B, n_noise), lambda: (0, 0)),
            pl.BlockSpec((3, d_pad, d_pad), lambda: (0, 0, 0)),
            pl.BlockSpec((6, d_pad), lambda: (0, 0)),
        ],
        out_specs=pl.BlockSpec((B, d), lambda: (0, 0)),
        compiler_params=pltpu.CompilerParams(
            # Hard design ceiling, not a knob to raise: v7x has only 64 MiB
            # physical VMEM and needs headroom for double-buffering once tiled.
            vmem_limit_bytes=32 * 1024 * 1024,
        ),
    )(noise, w_all, affine)
    # TODO(synk): generate the noise in-kernel (pltpu.prng_seed +
    #   pltpu.prng_random_bits -> normal) to drop the [B, n_noise] HBM read;
    #   kept as a host input here so the reference check stays deterministic.
    # TODO(synk): on v7x, split the batch across the two TensorCores and reduce
    #   the per-layer [2, d_pad] sum/sumsq in CMEM/VMEM_SHARED (core_barrier) to
    #   keep exact full-batch BN with negligible inter-core traffic.
    # TODO(synk): if B outgrows a single VMEM block, switch to a batch-tiled
    #   two-pass BN pipeline (pass 1: per-tile sum/sumsq accumulation on an
    #   "arbitrary" grid axis; pass 2: normalize + act) rather than raising
    #   vmem_limit_bytes; round d_pad up to 256 on v6e/v7x if d grows past 128.
    return out


def init_params(key, n_noise, d):
    """Parameters matching Generator(d, n_noise) at init.

    Weights use nn.Linear's default U(-1/sqrt(fan_in), 1/sqrt(fan_in)) init,
    stored as [in, out] (transpose of PyTorch), zero-padded and packed into one
    [3, d_pad, d_pad] bf16 stack (single DMA), W1 occupying rows [:n_noise].
    BatchNorm gamma/beta (init 1/0, as nn.BatchNorm1d) are packed into one
    [6, d_pad] f32 array, with gamma zeroed on padded lanes so the padding is
    inert by construction.  f32 weights and the (BN-cancelled) biases are kept
    only for the exact-PyTorch reference.
    """
    d_pad = _round_up(d, LANE)
    assert n_noise <= d_pad, "n_noise must fit the stacked weight's K dimension"
    ks = jax.random.split(key, 6)

    def linear(kw, kb, fan_in, fan_out):
        bound = 1.0 / (fan_in ** 0.5)
        w = jax.random.uniform(kw, (fan_in, fan_out), jnp.float32, -bound, bound)
        b = jax.random.uniform(kb, (fan_out,), jnp.float32, -bound, bound)
        return w, b

    w1, b1 = linear(ks[0], ks[1], n_noise, d)
    w2, b2 = linear(ks[2], ks[3], d, d)
    w3, b3 = linear(ks[4], ks[5], d, d)

    def pad_w(w):
        fi, fo = w.shape
        return jnp.zeros((d_pad, d_pad), jnp.float32).at[:fi, :fo].set(w)

    w_all = jnp.stack([pad_w(w1), pad_w(w2), pad_w(w3)]).astype(jnp.bfloat16)

    gamma = jnp.zeros((d_pad,), jnp.float32).at[:d].set(1.0)   # zero on padding
    beta = jnp.zeros((d_pad,), jnp.float32)
    affine = jnp.stack([gamma, beta, gamma, beta, gamma, beta], axis=0)  # [6,d_pad]

    return dict(
        w_all=w_all, affine=affine, d=d, n_noise=n_noise,
        w1=w1, b1=b1, w2=w2, b2=b2, w3=w3, b3=b3,   # f32 originals for reference
    )


def reference_forward_kernel_math(noise, params):
    """Pure-JAX mirror of the exact kernel math (bf16 weights, bias-free,
    folded BN affine) — tight check that the Pallas lowering is correct."""
    w_all, aff, d = params["w_all"], params["affine"], params["d"]
    n_noise = noise.shape[1]
    x = noise.astype(jnp.bfloat16)
    x = _bn_act_layer(x, w_all[0, :n_noise, :], aff[0:1], aff[1:2], jnp.tanh)
    x = _bn_act_layer(x.astype(jnp.bfloat16), w_all[1], aff[2:3], aff[3:4], jnp.tanh)
    x = _bn_act_layer(x.astype(jnp.bfloat16), w_all[2], aff[4:5], aff[5:6],
                      jax.nn.sigmoid)
    return x[:, :d]


def reference_forward_pytorch_f32(noise, params):
    """Exact f32 training-mode forward of the PyTorch Generator:
    Linear (with bias) -> BatchNorm1d with batch stats (gamma=1, beta=0 at
    init, biased variance) -> tanh / tanh / sigmoid."""
    def layer(x, w, b, act):
        h = jnp.dot(x, w, precision=jax.lax.Precision.HIGHEST) + b
        mean = jnp.mean(h, axis=0, keepdims=True)
        var = jnp.mean(jnp.square(h - mean), axis=0, keepdims=True)
        return act((h - mean) * jax.lax.rsqrt(var + BN_EPS))
    x = layer(noise, params["w1"], params["b1"], jnp.tanh)
    x = layer(x, params["w2"], params["b2"], jnp.tanh)
    x = layer(x, params["w3"], params["b3"], jax.nn.sigmoid)
    return x


if __name__ == "__main__":
    B, n_noise, d = 8, 16, 32
    key = jax.random.PRNGKey(0)
    k_noise, k_params = jax.random.split(key)

    noise = jax.random.normal(k_noise, (B, n_noise), jnp.float32)
    params = init_params(k_params, n_noise, d)

    out = jax.block_until_ready(generator_forward(noise, params))
    assert out.shape == (B, d)
    assert bool(jnp.isfinite(out).all()), "non-finite values in kernel output"

    # Tight check: Pallas kernel vs pure-JAX mirror of the same bf16 math.
    ref_math = reference_forward_kernel_math(noise, params)
    assert jnp.allclose(out, ref_math, atol=2e-3, rtol=2e-3), \
        "kernel does not match its own math reference"

    # Parity check: kernel vs exact f32 PyTorch-semantics Generator forward
    # (with linear biases); residual is bf16 weight quantization only.
    ref_f32 = reference_forward_pytorch_f32(noise, params)
    assert jnp.allclose(out, ref_f32, atol=2e-2), \
        "kernel drifts from the f32 PyTorch-semantics reference"

    print("KERNEL_OK")
</pallas_src>

<mosaic_0001>
module attributes {stable_mosaic.version = 11 : i64} {
  func.func @generator_kernel(%arg0: memref<8x16xf32, #tpu.memory_space<vmem>>, %arg1: memref<3x128x128xbf16, #tpu.memory_space<vmem>>, %arg2: memref<6x128xf32, #tpu.memory_space<vmem>>, %arg3: memref<8x32xf32, #tpu.memory_space<vmem>>) attributes {dimension_semantics = [], scalar_prefetch = 0 : i64, scratch_operands = 0 : i64, tpu.core_type = #tpu.core_type<tc>} {
    %c0 = arith.constant 0 : index
    %c0_0 = arith.constant 0 : index
    %0 = vector.load %arg2[%c0, %c0_0] : memref<6x128xf32, #tpu.memory_space<vmem>>, vector<6x128xf32>
    %c0_1 = arith.constant 0 : index
    %c0_2 = arith.constant 0 : index
    %1 = vector.load %arg0[%c0_1, %c0_2] : memref<8x16xf32, #tpu.memory_space<vmem>>, vector<8x16xf32>
    %2 = arith.truncf %1 : vector<8x16xf32> to vector<8x16xbf16>
    %c0_3 = arith.constant 0 : index
    %c0_4 = arith.constant 0 : index
    %c0_5 = arith.constant 0 : index
    %3 = vector.load %arg1[%c0_3, %c0_4, %c0_5] : memref<3x128x128xbf16, #tpu.memory_space<vmem>>, vector<1x128x128xbf16>
    %4 = vector.shape_cast %3 : vector<1x128x128xbf16> to vector<128x128xbf16>
    %5 = vector.extract_strided_slice %4 {offsets = [0, 0], sizes = [16, 128], strides = [1, 1]} : vector<128x128xbf16> to vector<16x128xbf16>
    %6 = vector.extract_strided_slice %0 {offsets = [0, 0], sizes = [1, 128], strides = [1, 1]} : vector<6x128xf32> to vector<1x128xf32>
    %7 = vector.extract_strided_slice %0 {offsets = [1, 0], sizes = [1, 128], strides = [1, 1]} : vector<6x128xf32> to vector<1x128xf32>
    %cst = arith.constant dense<0.000000e+00> : vector<8x128xf32>
    %8 = tpu.matmul %2, %5, %cst {dimension_numbers = #tpu.dot_dimension_numbers<[1], [0], [0], [1], [0, 0, 1, 1], [], []>} : vector<8x16xbf16>, vector<16x128xbf16>, vector<8x128xf32> -> vector<8x128xf32>
    %cst_6 = arith.constant dense<0.000000e+00> : vector<128xf32>
    %9 = vector.multi_reduction <add>, %8, %cst_6 [0] : vector<8x128xf32> to vector<128xf32>
    %10 = vector.shape_cast %9 : vector<128xf32> to vector<1x128xf32>
    %cst_7 = arith.constant 8.000000e+00 : f32
    %11 = vector.broadcast %cst_7 : f32 to vector<1x128xf32>
    %12 = arith.divf %10, %11 : vector<1x128xf32>
    %13 = vector.broadcast %12 : vector<1x128xf32> to vector<8x128xf32>
    %14 = arith.subf %8, %13 : vector<8x128xf32>
    %15 = arith.mulf %14, %14 : vector<8x128xf32>
    %cst_8 = arith.constant dense<0.000000e+00> : vector<128xf32>
    %16 = vector.multi_reduction <add>, %15, %cst_8 [0] : vector<8x128xf32> to vector<128xf32>
    %17 = vector.shape_cast %16 : vector<128xf32> to vector<1x128xf32>
    %cst_9 = arith.constant 8.000000e+00 : f32
    %18 = vector.broadcast %cst_9 : f32 to vector<1x128xf32>
    %19 = arith.divf %17, %18 : vector<1x128xf32>
    %cst_10 = arith.constant 9.99999974E-6 : f32
    %20 = vector.broadcast %cst_10 : f32 to vector<1x128xf32>
    %21 = arith.addf %19, %20 : vector<1x128xf32>
    %22 = math.rsqrt %21 : vector<1x128xf32>
    %23 = arith.mulf %6, %22 : vector<1x128xf32>
    %24 = arith.mulf %12, %23 : vector<1x128xf32>
    %25 = arith.subf %7, %24 : vector<1x128xf32>
    %26 = vector.broadcast %23 : vector<1x128xf32> to vector<8x128xf32>
    %27 = arith.mulf %8, %26 : vector<8x128xf32>
    %28 = vector.broadcast %25 : vector<1x128xf32> to vector<8x128xf32>
    %29 = arith.addf %27, %28 : vector<8x128xf32>
    %30 = math.tanh %29 : vector<8x128xf32>
    %31 = arith.truncf %30 : vector<8x128xf32> to vector<8x128xbf16>
    %c1 = arith.constant 1 : index
    %c0_11 = arith.constant 0 : index
    %c0_12 = arith.constant 0 : index
    %32 = vector.load %arg1[%c1, %c0_11, %c0_12] : memref<3x128x128xbf16, #tpu.memory_space<vmem>>, vector<1x128x128xbf16>
    %33 = vector.shape_cast %32 : vector<1x128x128xbf16> to vector<128x128xbf16>
    %34 = vector.extract_strided_slice %0 {offsets = [2, 0], sizes = [1, 128], strides = [1, 1]} : vector<6x128xf32> to vector<1x128xf32>
    %35 = vector.extract_strided_slice %0 {offsets = [3, 0], sizes = [1, 128], strides = [1, 1]} : vector<6x128xf32> to vector<1x128xf32>
    %cst_13 = arith.constant dense<0.000000e+00> : vector<8x128xf32>
    %36 = tpu.matmul %31, %33, %cst_13 {dimension_numbers = #tpu.dot_dimension_numbers<[1], [0], [0], [1], [0, 0, 1, 1], [], []>} : vector<8x128xbf16>, vector<128x128xbf16>, vector<8x128xf32> -> vector<8x128xf32>
    %cst_14 = arith.constant dense<0.000000e+00> : vector<128xf32>
    %37 = vector.multi_reduction <add>, %36, %cst_14 [0] : vector<8x128xf32> to vector<128xf32>
    %38 = vector.shape_cast %37 : vector<128xf32> to vector<1x128xf32>
    %cst_15 = arith.constant 8.000000e+00 : f32
    %39 = vector.broadcast %cst_15 : f32 to vector<1x128xf32>
    %40 = arith.divf %38, %39 : vector<1x128xf32>
    %41 = vector.broadcast %40 : vector<1x128xf32> to vector<8x128xf32>
    %42 = arith.subf %36, %41 : vector<8x128xf32>
    %43 = arith.mulf %42, %42 : vector<8x128xf32>
    %cst_16 = arith.constant dense<0.000000e+00> : vector<128xf32>
    %44 = vector.multi_reduction <add>, %43, %cst_16 [0] : vector<8x128xf32> to vector<128xf32>
    %45 = vector.shape_cast %44 : vector<128xf32> to vector<1x128xf32>
    %cst_17 = arith.constant 8.000000e+00 : f32
    %46 = vector.broadcast %cst_17 : f32 to vector<1x128xf32>
    %47 = arith.divf %45, %46 : vector<1x128xf32>
    %cst_18 = arith.constant 9.99999974E-6 : f32
    %48 = vector.broadcast %cst_18 : f32 to vector<1x128xf32>
    %49 = arith.addf %47, %48 : vector<1x128xf32>
    %50 = math.rsqrt %49 : vector<1x128xf32>
    %51 = arith.mulf %34, %50 : vector<1x128xf32>
    %52 = arith.mulf %40, %51 : vector<1x128xf32>
    %53 = arith.subf %35, %52 : vector<1x128xf32>
    %54 = vector.broadcast %51 : vector<1x128xf32> to vector<8x128xf32>
    %55 = arith.mulf %36, %54 : vector<8x128xf32>
    %56 = vector.broadcast %53 : vector<1x128xf32> to vector<8x128xf32>
    %57 = arith.addf %55, %56 : vector<8x128xf32>
    %58 = math.tanh %57 : vector<8x128xf32>
    %59 = arith.truncf %58 : vector<8x128xf32> to vector<8x128xbf16>
    %c2 = arith.constant 2 : index
    %c0_19 = arith.constant 0 : index
    %c0_20 = arith.constant 0 : index
    %60 = vector.load %arg1[%c2, %c0_19, %c0_20] : memref<3x128x128xbf16, #tpu.memory_space<vmem>>, vector<1x128x128xbf16>
    %61 = vector.shape_cast %60 : vector<1x128x128xbf16> to vector<128x128xbf16>
    %62 = vector.extract_strided_slice %0 {offsets = [4, 0], sizes = [1, 128], strides = [1, 1]} : vector<6x128xf32> to vector<1x128xf32>
    %63 = vector.extract_strided_slice %0 {offsets = [5, 0], sizes = [1, 128], strides = [1, 1]} : vector<6x128xf32> to vector<1x128xf32>
    %cst_21 = arith.constant dense<0.000000e+00> : vector<8x128xf32>
    %64 = tpu.matmul %59, %61, %cst_21 {dimension_numbers = #tpu.dot_dimension_numbers<[1], [0], [0], [1], [0, 0, 1, 1], [], []>} : vector<8x128xbf16>, vector<128x128xbf16>, vector<8x128xf32> -> vector<8x128xf32>
    %cst_22 = arith.constant dense<0.000000e+00> : vector<128xf32>
    %65 = vector.multi_reduction <add>, %64, %cst_22 [0] : vector<8x128xf32> to vector<128xf32>
    %66 = vector.shape_cast %65 : vector<128xf32> to vector<1x128xf32>
    %cst_23 = arith.constant 8.000000e+00 : f32
    %67 = vector.broadcast %cst_23 : f32 to vector<1x128xf32>
    %68 = arith.divf %66, %67 : vector<1x128xf32>
    %69 = vector.broadcast %68 : vector<1x128xf32> to vector<8x128xf32>
    %70 = arith.subf %64, %69 : vector<8x128xf32>
    %71 = arith.mulf %70, %70 : vector<8x128xf32>
    %cst_24 = arith.constant dense<0.000000e+00> : vector<128xf32>
    %72 = vector.multi_reduction <add>, %71, %cst_24 [0] : vector<8x128xf32> to vector<128xf32>
    %73 = vector.shape_cast %72 : vector<128xf32> to vector<1x128xf32>
    %cst_25 = arith.constant 8.000000e+00 : f32
    %74 = vector.broadcast %cst_25 : f32 to vector<1x128xf32>
    %75 = arith.divf %73, %74 : vector<1x128xf32>
    %cst_26 = arith.constant 9.99999974E-6 : f32
    %76 = vector.broadcast %cst_26 : f32 to vector<1x128xf32>
    %77 = arith.addf %75, %76 : vector<1x128xf32>
    %78 = math.rsqrt %77 : vector<1x128xf32>
    %79 = arith.mulf %62, %78 : vector<1x128xf32>
    %80 = arith.mulf %68, %79 : vector<1x128xf32>
    %81 = arith.subf %63, %80 : vector<1x128xf32>
    %82 = vector.broadcast %79 : vector<1x128xf32> to vector<8x128xf32>
    %83 = arith.mulf %64, %82 : vector<8x128xf32>
    %84 = vector.broadcast %81 : vector<1x128xf32> to vector<8x128xf32>
    %85 = arith.addf %83, %84 : vector<8x128xf32>
    %86 = arith.negf %85 : vector<8x128xf32>
    %87 = math.exp %86 : vector<8x128xf32>
    %cst_27 = arith.constant 1.000000e+00 : f32
    %88 = vector.broadcast %cst_27 : f32 to vector<8x128xf32>
    %89 = arith.addf %88, %87 : vector<8x128xf32>
    %90 = arith.divf %88, %89 : vector<8x128xf32>
    %91 = vector.extract_strided_slice %90 {offsets = [0, 0], sizes = [8, 32], strides = [1, 1]} : vector<8x128xf32> to vector<8x32xf32>
    %c0_28 = arith.constant 0 : index
    %c0_29 = arith.constant 0 : index
    %92 = vector.load %arg3[%c0_28, %c0_29] : memref<8x32xf32, #tpu.memory_space<vmem>>, vector<8x32xf32>
    tpu.vector_store %arg3[%c0_28, %c0_29], %91 {strides = array<i32>} : memref<8x32xf32, #tpu.memory_space<vmem>>, vector<8x32xf32>,
    return
  }
}

</mosaic_0001>

<bundles_post_ra>
// kernel: tpu_custom_call.1
= control target key start
LH: loop header
LB: loop body
LE: loop exit
PB: predicated region body
PF: predicated region fallthrough
CT: control target
= control target key end

     0   :  { %8 = vsyncpa [#allocation3], 0  ;;  %s671_s0 = inlined_call_operand.hbm [shape: f32[8,16], index: 0, kind: input, shape index: {}]   ;;  %s672_s1 = inlined_call_operand.hbm [shape: bf16[3,128,128], index: 1, kind: input, shape index: {}]   ;;  %s673_s2 = inlined_call_operand.hbm [shape: f32[6,128], index: 2, kind: input, shape index: {}]   ;;  %s674_s3 = inlined_call_operand.hbm [shape: f32[8,32], index: 3, kind: output, shape index: {}]  }
   0x1   :  { %9 = vsyncpa [#allocation6], 0  ;;  %s26_s14 = sshll.u32 %s672_s1, 4  ;;  %s27_s14 = int_to_ptr.hbm [resolvable:$true] %s26_s14 }
   0x2   :  { %10 = vsyncpa [#allocation4], 0  ;;  %s616_s15 = smov [#allocation5]   ;;  %s16_s19 = sshll.u32 %s671_s0, 4  ;;  %s17_s19 = int_to_ptr.hbm [resolvable:$true] %s16_s19 }
   0x3   :  { %s28_s16 = sshll.u32 %s616_s15, 4  ;;  %s617_s20 = smov 64   ;;  %s29_s16 = int_to_ptr.vmem [resolvable:$true] %s28_s16 }
   0x4   :  { %s618_s21 = smov 4   ;;  %s619_s22 = smov [#allocation2]  }
   0x5   :  { %34 = dma.hbm_to_vmem [thread:$0]  %s27_s14, 3072, %s29_s16, [#allocation6], %s617_s20, %s617_s20, %s618_s21  }
   0x6   :  { %s18_s23 = sshll.u32 %s619_s22, 4  ;;  %s40_s26 = sshll.u32 %s673_s2, 4  ;;  %s19_s23 = int_to_ptr.vmem [resolvable:$true] %s18_s23  ;;  %s41_s26 = int_to_ptr.hbm [resolvable:$true] %s40_s26 }
   0x7   :  { %21 = dma.hbm_to_vmem [thread:$0]  %s17_s19, 128, %s19_s23, [#allocation3]  }
   0x8   :  { %s620_s1 = smov [#allocation7]  }
   0x9   :  { %s42_s27 = sshll.u32 %s620_s1, 4  ;;  %s43_s27 = int_to_ptr.vmem [resolvable:$true] %s42_s27 }
   0xa   :  { %45 = dma.hbm_to_vmem [thread:$0]  %s41_s26, 128, %s43_s27, [#allocation6]  }
   0xb   :  { %610 = dma.done.wait [#allocation3], 128  }
   0xc   :  { %611 = vsyncadd [#allocation3], 4294967168 }
   0xd   :  { %612 = dma.done.wait [#allocation6], 3200  }
   0xe   :  { %613 = vsyncadd [#allocation6], 4294964096  ;;  %v474_v0 = vld [vmem:[#allocation5] sm:$0xff]  ;;  %v60_v1 = vld [vmem:[#allocation2] sm:$0xff]  ;;  %vm70_vm0 = vcmask 130048   ;;  %v621_v3 = vmov 8.0  }
   0xf   :  { %v61_v2 = vpack.c.bf16 %v60_v1, %v60_v1  ;;  %81 = vmatpush.bf16.msra.mxu0 %v474_v0  ;;  %498 = vrcp.f32 %v621_v3  ;;  %v482_v16 = vld [vmem:[#allocation5 + $0x78] sm:$0xff]  ;;  %v481_v19 = vld [vmem:[#allocation5 + $0x70] sm:$0xff]  ;;  %v480_v22 = vld [vmem:[#allocation5 + $0x68] sm:$0xff]  ;;  %s622_s0 = smov [#allocation8]   ;;  %s393_s30 = sshll.u32 %s674_s3, 4  ;;  %vm384_vm14 = vcmask 261120   ;;  %s394_s30 = int_to_ptr.hbm [resolvable:$true] %s393_s30 }
  0x10   :  { %198 = vmatpush.bf16.msra.mxu1 %v482_v16  ;;  %v479_v25 = vld [vmem:[#allocation5 + $0x60] sm:$0xff]  ;;  %v478_v28 = vld [vmem:[#allocation5 + $0x58] sm:$0xff]  ;;  %v477_v31 = vld [vmem:[#allocation5 + $0x50] sm:$0xff]  ;;  %s391_s2 = sshll.u32 %s622_s0, 4  ;;  %s392_s2 = int_to_ptr.vmem [resolvable:$true] %s391_s2 }
  0x11   :  { %v476_v34 = vld [vmem:[#allocation5 + $0x48] sm:$0xff]  ;;  %v475_v36 = vld [vmem:[#allocation5 + $0x40] sm:$0xff]  ;;  %v490_v62 = vld [vmem:[#allocation5 + $0xb8] sm:$0xff] }
  0x12   :  { %408 = vmatmul.msk.bf16.vlgmr.msra.gmra.mxu0 %vm70_vm0, %v61_v2  ;;  %v656_v42 = vld [vmem:[#allocation7] sm:$0x3f]  ;;  %315 = vmatpush.bf16.msra.mxu2 %v490_v62  ;;  %v489_v0 = vld [vmem:[#allocation5 + $0xb0] sm:$0xff]  ;;  %v488_v3 = vld [vmem:[#allocation5 + $0xa8] sm:$0xff] }
  0x14   :  { %199 = vmatpush.bf16.msra.mxu1 %v481_v19 }
  0x15   :  { %v499_v4 = vpop.eup %498 }
  0x16   :  { %v94_v5 = vmul.f32 8.0, %v499_v4  ;;  %vm98_vm1 = vweird.f32 %v499_v4  ;;  %316 = vmatpush.bf16.msra.mxu2 %v489_v0 }
  0x18   :  { %v95_v6 = vsub.f32 1.0, %v94_v5  ;;  %200 = vmatpush.bf16.msra.mxu1 %v480_v22 }
  0x1a   :  { %v96_v9 = vmul.f32 %v499_v4, %v95_v6  ;;  %317 = vmatpush.bf16.msra.mxu2 %v488_v3  ;;  %v487_v6 = vld [vmem:[#allocation5 + $0xa0] sm:$0xff] }
  0x1c   :  { %v97_v12 = vadd.f32 %v499_v4, %v96_v9  ;;  %201 = vmatpush.bf16.msra.mxu1 %v479_v25  ;;  %v486_v9 = vld [vmem:[#allocation5 + $0x98] sm:$0xff] }
  0x1e   :  { %v652_v17 = vsel %vm98_vm1, %v499_v4, %v97_v12  ;;  %318 = vmatpush.bf16.msra.mxu2 %v487_v6  ;;  %v485_v12 = vld [vmem:[#allocation5 + $0x90] sm:$0xff] }
  0x20   :  { %202 = vmatpush.bf16.msra.mxu1 %v478_v28 }
  0x22   :  { %319 = vmatpush.bf16.msra.mxu2 %v486_v9 }
  0x24   :  { %203 = vmatpush.bf16.msra.mxu1 %v477_v31 }
  0x26   :  { %320 = vmatpush.bf16.msra.mxu2 %v485_v12 }
  0x28   :  { %204 = vmatpush.bf16.msra.mxu1 %v476_v34 }
  0x2c   :  { %205 = vmatpush.bf16.msra.mxu1 %v475_v36 }
  0x8f   :  { %v83_v7 = vpop.f32.mrf.mxu0 }
  0x90   :  { %v87_v8 = vrot.slane %v83_v7, 4 }
  0x92   :  { %v88_v10 = vadd.f32 %v87_v8, %v83_v7 }
  0x94   :  { %v89_v11 = vrot.slane %v88_v10, 2 }
  0x96   :  { %v90_v13 = vadd.f32 %v89_v11, %v88_v10 }
  0x97   :  { %v85_v14 = vpop.f32.mrf.mxu0 }
  0x98   :  { %v91_v15 = vrot.slane %v90_v13, 1 }
  0x9a   :  { %v92_v18 = vadd.f32 %v91_v15, %v90_v13  ;;  %v484_v15 = vld [vmem:[#allocation5 + $0x88] sm:$0xff] }
  0x9b   :  { %321 = vmatpush.bf16.msra.mxu2 %v484_v15 }
  0x9c   :  { %v100_v20 = vmul.f32 %v652_v17, %v92_v18  ;;  %v483_v18 = vld [vmem:[#allocation5 + $0x80] sm:$0xff] }
  0x9e   :  { %v101_v21 = vsub.f32 %v83_v7, %v100_v20 }
  0x9f   :  { %322 = vmatpush.bf16.msra.mxu2 %v483_v18 }
  0xa0   :  { %v102_v23 = vmul.f32 %v101_v21, %v101_v21 }
  0xa2   :  { %v103_v24 = vrot.slane %v102_v23, 4 }
  0xa4   :  { %v104_v26 = vadd.f32 %v103_v24, %v102_v23 }
  0xa6   :  { %v105_v27 = vrot.slane %v104_v26, 2 }
  0xa8   :  { %v106_v29 = vadd.f32 %v105_v27, %v104_v26 }
  0xaa   :  { %v107_v30 = vrot.slane %v106_v29, 1 }
  0xac   :  { %v108_v32 = vadd.f32 %v107_v30, %v106_v29 }
  0xae   :  { %v109_v33 = vmul.f32 %v108_v32, %v652_v17 }
  0xb0   :  { %v110_v35 = vadd.f32 1e-05, %v109_v33 }
  0xb2   :  { %500 = vrsqrt.f32 %v110_v35  ;;  %vm117_vm3 = vweird.f32 %v110_v35 }
  0xb8   :  { %v501_v37 = vpop.eup %500 }
  0xb9   :  { %v112_v38 = vmul.f32 %v501_v37, %v110_v35  ;;  %vm118_vm2 = vweird.f32 %v501_v37 }
  0xba   :  { %vm119_vm4 = vmor %vm117_vm3, %vm118_vm2 }
  0xbb   :  { %v113_v39 = vmul.f32 %v501_v37, %v112_v38 }
  0xbd   :  { %v114_v40 = vmul.f32 0.5, %v113_v39 }
  0xbf   :  { %v115_v41 = vsub.f32 1.5, %v114_v40 }
  0xc1   :  { %v116_v43 = vmul.f32 %v501_v37, %v115_v41 }
  0xc3   :  { %v120_v44 = vsel %vm119_vm4, %v501_v37, %v116_v43 }
  0xc4   :  { %v121_v45 = vmul.f32 %v120_v44, %v656_v42 }
  0xc6   :  { %v122_v46 = vmul.f32 %v121_v45, %v100_v20  ;;  %v127_v48 = vperm.slane %v121_v45, 0 }
  0xc8   :  { %v124_v47 = vrot.slane %v122_v46, 7  ;;  %v128_v50 = vmul.f32 %v127_v48, %v83_v7 }
  0xca   :  { %v126_v49 = vsub.f32 %v656_v42, %v124_v47 }
  0xcc   :  { %v129_v51 = vperm.slane %v126_v49, 1 }
  0xce   :  { %v130_v52 = vadd.f32 %v129_v51, %v128_v50 }
  0xd0   :  { %502 = vtanh.f32 %v130_v52 }
  0xd6   :  { %v503_v53 = vpop.eup %502 }
  0xd7   :  { %v132_v54 = vpack.c.bf16 %v503_v53, %v503_v53 }
  0xd9   :  { %206 = vmatmul.bf16.vlgmr.msra.gmra.mxu1 %v132_v54 }
 0x156   :  { %v207_v55 = vpop.f32.mrf.mxu1 }
 0x157   :  { %v211_v56 = vrot.slane %v207_v55, 4 }
 0x159   :  { %v212_v57 = vadd.f32 %v211_v56, %v207_v55 }
 0x15b   :  { %v213_v58 = vrot.slane %v212_v57, 2 }
 0x15d   :  { %v214_v59 = vadd.f32 %v213_v58, %v212_v57 }
 0x15e   :  { %v209_v60 = vpop.f32.mrf.mxu1 }
 0x15f   :  { %v215_v61 = vrot.slane %v214_v59, 1 }
 0x161   :  { %v216_v63 = vadd.f32 %v215_v61, %v214_v59 }
 0x163   :  { %v217_v1 = vmul.f32 %v216_v63, %v652_v17 }
 0x165   :  { %v218_v2 = vsub.f32 %v207_v55, %v217_v1 }
 0x167   :  { %v219_v4 = vmul.f32 %v218_v2, %v218_v2 }
 0x169   :  { %v220_v5 = vrot.slane %v219_v4, 4 }
 0x16b   :  { %v221_v7 = vadd.f32 %v220_v5, %v219_v4 }
 0x16d   :  { %v222_v8 = vrot.slane %v221_v7, 2 }
 0x16f   :  { %v223_v10 = vadd.f32 %v222_v8, %v221_v7 }
 0x171   :  { %v224_v11 = vrot.slane %v223_v10, 1 }
 0x173   :  { %v225_v13 = vadd.f32 %v224_v11, %v223_v10 }
 0x175   :  { %v226_v14 = vmul.f32 %v225_v13, %v652_v17 }
 0x177   :  { %v227_v16 = vadd.f32 1e-05, %v226_v14 }
 0x179   :  { %504 = vrsqrt.f32 %v227_v16  ;;  %vm234_vm6 = vweird.f32 %v227_v16 }
 0x17f   :  { %v505_v19 = vpop.eup %504 }
 0x180   :  { %v229_v20 = vmul.f32 %v505_v19, %v227_v16  ;;  %vm235_vm5 = vweird.f32 %v505_v19 }
 0x181   :  { %vm236_vm7 = vmor %vm234_vm6, %vm235_vm5 }
 0x182   :  { %v230_v21 = vmul.f32 %v505_v19, %v229_v20 }
 0x184   :  { %v231_v22 = vmul.f32 0.5, %v230_v21 }
 0x186   :  { %v232_v23 = vsub.f32 1.5, %v231_v22 }
 0x188   :  { %v233_v24 = vmul.f32 %v505_v19, %v232_v23 }
 0x18a   :  { %v237_v25 = vsel %vm236_vm7, %v505_v19, %v233_v24 }
 0x18b   :  { %v238_v26 = vmul.f32 %v237_v25, %v656_v42 }
 0x18d   :  { %v239_v27 = vmul.f32 %v238_v26, %v217_v1  ;;  %v244_v29 = vperm.slane %v238_v26, 2 }
 0x18f   :  { %v241_v28 = vrot.slane %v239_v27, 7  ;;  %v245_v31 = vmul.f32 %v244_v29, %v207_v55 }
 0x191   :  { %v243_v30 = vsub.f32 %v656_v42, %v241_v28 }
 0x193   :  { %v246_v32 = vperm.slane %v243_v30, 3 }
 0x195   :  { %v247_v33 = vadd.f32 %v246_v32, %v245_v31 }
 0x197   :  { %506 = vtanh.f32 %v247_v33 }
 0x19d   :  { %v507_v34 = vpop.eup %506 }
 0x19e   :  { %v249_v35 = vpack.c.bf16 %v507_v34, %v507_v34 }
 0x1a0   :  { %323 = vmatmul.bf16.vlgmr.msra.gmra.mxu2 %v249_v35 }
 0x223   :  { %v324_v36 = vpop.f32.mrf.mxu2 }
 0x224   :  { %v328_v37 = vrot.slane %v324_v36, 4 }
 0x226   :  { %v329_v38 = vadd.f32 %v328_v37, %v324_v36 }
 0x228   :  { %v330_v39 = vrot.slane %v329_v38, 2 }
 0x22a   :  { %v331_v40 = vadd.f32 %v330_v39, %v329_v38 }
 0x22b   :  { %v326_v41 = vpop.f32.mrf.mxu2 }
 0x22c   :  { %v332_v43 = vrot.slane %v331_v40, 1 }
 0x22e   :  { %v333_v44 = vadd.f32 %v332_v43, %v331_v40 }
 0x230   :  { %v334_v45 = vmul.f32 %v333_v44, %v652_v17 }
 0x232   :  { %v335_v46 = vsub.f32 %v324_v36, %v334_v45 }
 0x234   :  { %v336_v47 = vmul.f32 %v335_v46, %v335_v46 }
 0x236   :  { %v337_v48 = vrot.slane %v336_v47, 4 }
 0x238   :  { %v338_v49 = vadd.f32 %v337_v48, %v336_v47 }
 0x23a   :  { %v339_v50 = vrot.slane %v338_v49, 2 }
 0x23c   :  { %v340_v51 = vadd.f32 %v339_v50, %v338_v49 }
 0x23e   :  { %v341_v52 = vrot.slane %v340_v51, 1 }
 0x240   :  { %v342_v53 = vadd.f32 %v341_v52, %v340_v51 }
 0x242   :  { %v343_v54 = vmul.f32 %v342_v53, %v652_v17 }
 0x244   :  { %v344_v55 = vadd.f32 1e-05, %v343_v54 }
 0x246   :  { %508 = vrsqrt.f32 %v344_v55  ;;  %vm351_vm9 = vweird.f32 %v344_v55 }
 0x24c   :  { %v509_v56 = vpop.eup %508 }
 0x24d   :  { %v346_v57 = vmul.f32 %v509_v56, %v344_v55  ;;  %vm352_vm8 = vweird.f32 %v509_v56 }
 0x24e   :  { %vm353_vm10 = vmor %vm351_vm9, %vm352_vm8 }
 0x24f   :  { %v347_v58 = vmul.f32 %v509_v56, %v346_v57 }
 0x251   :  { %v348_v59 = vmul.f32 0.5, %v347_v58 }
 0x253   :  { %v349_v60 = vsub.f32 1.5, %v348_v59 }
 0x255   :  { %v350_v61 = vmul.f32 %v509_v56, %v349_v60 }
 0x257   :  { %v354_v62 = vsel %vm353_vm10, %v509_v56, %v350_v61 }
 0x258   :  { %v355_v63 = vmul.f32 %v354_v62, %v656_v42 }
 0x25a   :  { %v356_v0 = vmul.f32 %v355_v63, %v334_v45  ;;  %v361_v2 = vperm.slane %v355_v63, 4 }
 0x25c   :  { %v358_v1 = vrot.slane %v356_v0, 7  ;;  %v362_v17 = vmul.f32 %v361_v2, %v324_v36 }
 0x25e   :  { %v360_v3 = vsub.f32 %v656_v42, %v358_v1 }
 0x260   :  { %v363_v4 = vperm.slane %v360_v3, 5 }
 0x262   :  { %v364_v5 = vadd.f32 %v363_v4, %v362_v17 }
 0x264   :  { %v473_v6 = vmul.f32 -1.442695, %v364_v5 }
 0x266   :  { %510 = vpow2.f32 %v473_v6 }
 0x26c   :  { %v511_v7 = vpop.eup %510 }
 0x26d   :  { %v368_v8 = vadd.f32 1.0, %v511_v7 }
 0x26f   :  { %512 = vrcp.f32 %v368_v8  ;;  %v380_v12 = vand.u32 2147483648, %v368_v8  ;;  %v378_v14 = vand.u32 2147483647, %v368_v8  ;;  %vm374_vm12 = vweird.f32 %v368_v8 }
 0x271   :  { %v381_v15 = vor.u32 1.1754944e-38, %v380_v12  ;;  %vm379_vm15 = vcmp.eq.f32.partialorder %v378_v14, 8.507059e+37 }
 0x275   :  { %v513_v9 = vpop.eup %512 }
 0x276   :  { %v370_v10 = vmul.f32 %v513_v9, %v368_v8  ;;  %vm375_vm11 = vweird.f32 %v513_v9 }
 0x277   :  { %vm376_vm13 = vmor %vm374_vm12, %vm375_vm11 }
 0x278   :  { %v371_v11 = vsub.f32 1.0, %v370_v10 }
 0x27a   :  { %v372_v13 = vmul.f32 %v513_v9, %v371_v11 }
 0x27c   :  { %v373_v42 = vadd.f32 %v513_v9, %v372_v13 }
 0x27e   :  { %v377_v16 = vsel %vm376_vm13, %v513_v9, %v373_v42 }
 0x27f   :  { %v382_v18 = vsel %vm379_vm15, %v381_v15, %v377_v16 }
 0x280   :  { %385 = vst.msk [vmem:[#allocation8] sm:$0xff] %vm384_vm14, %v382_v18 }
 0x281   :  { %396 = dma.vmem_to_hbm [thread:$0]  %s392_s2, 128, %s394_s30, [#allocation4]  }
 0x282   :  { %614 = dma.done.wait [#allocation4], 128  }
 0x283   :  { %615 = vsyncadd [#allocation4], 4294967168 }
 0x284   :  { %401 = vsyncpa [#allocation3], 1 }
 0x285   :  { %402 = vsyncpa [#allocation6], 1 }
 0x286   :  { %403 = vsyncpa [#allocation4], 1 }

</bundles_post_ra>
